<compile_context>
chip_gen: v6e
topology: v6e:2x2x1
jax: 0.10.0
libtpu: 0.0.40
codegen_flags: <defaults>
</compile_context>

<pallas_src>
import jax
import jax.numpy as jnp
from jax.experimental import pallas as pl
from jax.experimental.pallas import tpu as pltpu


def _round_up(x, m):
    return ((x + m - 1) // m) * m


def _vmem_params():
    """(vmem_limit_bytes, total_tile_budget_bytes) per TPU generation."""
    kind = ""
    try:
        kind = jax.devices()[0].device_kind.lower()
    except Exception:
        pass
    if any(t in kind for t in ("v4", "v5", "v6")):
        return 96 * 2**20, 48 * 2**20      # 128 MiB physical VMEM per core
    return 48 * 2**20, 24 * 2**20          # v7x (64 MiB physical) / unknown


def _pick_tile_rows(rows, in_row_bytes, out_row_bytes, fixed_bytes, budget):
    """Largest row tile under the (padding-aware) VMEM budget, capped so the grid
    keeps >= ~8 steps, preferring an exact divisor of `rows` (no pad/slice)."""
    per_row = 2 * (in_row_bytes + out_row_bytes)              # 2x double-buffering
    slack = 2 * (16 * in_row_bytes + 8 * out_row_bytes)       # sublane round-up slack
    avail = max(per_row, budget - fixed_bytes - slack)
    budget_tile = max(8, avail // per_row)
    cap = max(8, -(-rows // 8))          # >= ~8 grid steps (v7x: 2 TCs, pipelining)
    tile = int(min(rows, budget_tile, cap))
    if tile >= 8:
        tile = (tile // 8) * 8           # clean sublane tiling
    # Prefer a divisor of rows -> no trailing partial block, no padding round trip.
    for d in range(tile, 0, -1):
        if rows % d == 0:
            if d == tile or d >= max(8, tile // 4):
                return d, rows // d
            break
    # Fall back: let Pallas mask the trailing partial block (no jnp.pad needed).
    return tile, -(-rows // tile)


def _deconv2x2_kernel(x_ref, w_ref, b_ref, o_ref):
    """x: (tile_r, W*Cin) bf16; w: (W*Cin, 4*W*Cout) bf16; b: (1, 4*W*Cout) f32;
    o: (tile_r, 4*W*Cout) f32 whose row-major layout is (tile_r, 2, W, 2, Cout)."""
    acc = jnp.dot(x_ref[...], w_ref[...], preferred_element_type=jnp.float32)
    o_ref[...] = acc + b_ref[...]


def deconv_block_nhwc(x_nhwc, weight, bias):
    """ConvTranspose2d(Cin, Cout, kernel_size=2, stride=2, padding=0), NHWC in/out.

    x_nhwc: (N, H, W, Cin); weight: PyTorch layout (Cin, Cout, 2, 2); bias: (Cout,).
    Returns (N, 2H, 2W, Cout) float32.  Transpose-free (row-major reshapes only).
    """
    N, H, W, Cin = x_nhwc.shape
    Cout = weight.shape[1]
    rows = N * H
    out_lanes = 2 * W * 2 * Cout           # minor dims (dy, w, dx, co) folded to lanes

    # TODO(synk): the folded weight is (W*Cin, 4*W*Cout); for very large W*Cout
    # (>~ a few MiB) switch to a per-dy, K-tiled variant instead of folding W.

    # Lane-dense bf16 input slab (free reshape of NHWC rows).
    x2 = x_nhwc.reshape(rows, W * Cin).astype(jnp.bfloat16)

    # Block-diagonal-in-w weight:
    #   Wbig[(w, ci), (dy, w', dx, co)] = [w == w'] * weight[ci, co, dy, dx]
    eye_w = jnp.eye(W, dtype=jnp.float32)
    w_big = jnp.einsum("wv,ioyx->wiyvxo", eye_w, weight.astype(jnp.float32))
    w_big = w_big.reshape(W * Cin, out_lanes).astype(jnp.bfloat16)
    b_big = jnp.tile(bias.astype(jnp.float32), 4 * W).reshape(1, out_lanes)

    # Padding-aware VMEM accounting (lanes rounded to 128, sublanes to 8/16).
    vmem_limit, budget = _vmem_params()
    in_row_bytes = _round_up(W * Cin, 128) * 2            # bf16
    out_row_bytes = _round_up(out_lanes, 128) * 4         # f32
    fixed_bytes = 2 * (_round_up(W * Cin, 16) * _round_up(out_lanes, 128) * 2   # weight
                       + 8 * _round_up(out_lanes, 128) * 4)                     # bias
    tile_r, num_steps = _pick_tile_rows(rows, in_row_bytes, out_row_bytes,
                                        fixed_bytes, budget)

    out = pl.pallas_call(
        _deconv2x2_kernel,
        out_shape=jax.ShapeDtypeStruct((rows, out_lanes), jnp.float32),
        grid_spec=pltpu.PrefetchScalarGridSpec(
            num_scalar_prefetch=0,
            grid=(num_steps,),
            in_specs=[
                pl.BlockSpec((tile_r, W * Cin), lambda i: (i, 0)),
                pl.BlockSpec((W * Cin, out_lanes), lambda i: (0, 0)),   # resident
                pl.BlockSpec((1, out_lanes), lambda i: (0, 0)),         # resident
            ],
            out_specs=pl.BlockSpec((tile_r, out_lanes), lambda i: (i, 0)),
        ),
        compiler_params=pltpu.CompilerParams(
            dimension_semantics=("parallel",),       # rows are independent
            vmem_limit_bytes=vmem_limit,
        ),
    )(x2, w_big, b_big)

    # Row-major (rows, 2, W, 2, Cout) == (N, 2H, 2W, Cout): free reshape.
    return out.reshape(N, 2 * H, 2 * W, Cout)


def deconv_block(x_nchw, weight, bias):
    """PyTorch-interface forward (NCHW in, NCHW out) of DeConvBlock.

    The two transposes below are the only non-kernel HBM passes; call
    deconv_block_nhwc directly in an NHWC network to avoid them.
    """
    out = deconv_block_nhwc(jnp.transpose(x_nchw, (0, 2, 3, 1)), weight, bias)
    return jnp.transpose(out, (0, 3, 1, 2))


if __name__ == "__main__":
    key = jax.random.PRNGKey(0)
    k1, k2, k3 = jax.random.split(key, 3)

    N, Cin, H, W, Cout = 2, 4, 16, 16, 8
    x = jax.random.normal(k1, (N, Cin, H, W), jnp.float32)
    fan_in = float(Cin * 2 * 2)
    weight = jax.random.normal(k2, (Cin, Cout, 2, 2), jnp.float32) / jnp.sqrt(fan_in)
    bias = jax.random.normal(k3, (Cout,), jnp.float32) / jnp.sqrt(fan_in)

    fwd = jax.jit(deconv_block)
    out = jax.block_until_ready(fwd(x, weight, bias))
    assert out.shape == (N, Cout, 2 * H, 2 * W), out.shape
    assert bool(jnp.all(jnp.isfinite(out)))

    # Reference for ConvTranspose2d(k=2, s=2, p=0):
    #   out[n, o, 2h+dy, 2w+dx] = b[o] + sum_i x[n,i,h,w] * w[i,o,dy,dx]
    def ref_convT(xi, wi, bi):
        r = jnp.einsum("nihw,ioyx->nohywx", xi, wi,
                       precision=jax.lax.Precision.HIGHEST)
        return r.reshape(N, Cout, 2 * H, 2 * W) + bi[None, :, None, None]

    # Tight check against the same bf16-quantized inputs the kernel consumes.
    xq = x.astype(jnp.bfloat16).astype(jnp.float32)
    wq = weight.astype(jnp.bfloat16).astype(jnp.float32)
    err_q = float(jnp.max(jnp.abs(out - ref_convT(xq, wq, bias))))
    assert err_q < 1e-3, err_q

    # Loose check against the full-precision PyTorch-equivalent reference.
    err_f = float(jnp.max(jnp.abs(out - ref_convT(x, weight, bias))))
    assert err_f < 5e-2, err_f

    print("KERNEL_OK")
</pallas_src>

<mosaic_0001>
module attributes {stable_mosaic.version = 11 : i64} {
  func.func @_deconv2x2_kernel(%arg0: i32, %arg1: memref<8x64xbf16, #tpu.memory_space<vmem>>, %arg2: memref<64x512xbf16, #tpu.memory_space<vmem>>, %arg3: memref<1x512xf32, #tpu.memory_space<vmem>>, %arg4: memref<8x512xf32, #tpu.memory_space<vmem>>) attributes {dimension_semantics = [#tpu.dimension_semantics<parallel>], iteration_bounds = array<i64: 4>, scalar_prefetch = 0 : i64, scratch_operands = 0 : i64, tpu.core_type = #tpu.core_type<tc>, window_params = [{transform_indices = @transform_0, window_bounds = array<i64: 8, 64>}, {pipeline_mode = #tpu.pipeline_mode<synchronous>, transform_indices = @transform_1, window_bounds = array<i64: 64, 512>}, {pipeline_mode = #tpu.pipeline_mode<synchronous>, transform_indices = @transform_2, window_bounds = array<i64: 1, 512>}, {transform_indices = @transform_3, window_bounds = array<i64: 8, 512>}]} {
    %c0 = arith.constant 0 : index
    %c0_0 = arith.constant 0 : index
    %0 = vector.load %arg1[%c0, %c0_0] : memref<8x64xbf16, #tpu.memory_space<vmem>>, vector<8x64xbf16>
    %c0_1 = arith.constant 0 : index
    %c0_2 = arith.constant 0 : index
    %1 = vector.load %arg2[%c0_1, %c0_2] : memref<64x512xbf16, #tpu.memory_space<vmem>>, vector<64x512xbf16>
    %cst = arith.constant dense<0.000000e+00> : vector<8x512xf32>
    %2 = tpu.matmul %0, %1, %cst {dimension_numbers = #tpu.dot_dimension_numbers<[1], [0], [0], [1], [0, 0, 1, 1], [], []>} : vector<8x64xbf16>, vector<64x512xbf16>, vector<8x512xf32> -> vector<8x512xf32>
    %c0_3 = arith.constant 0 : index
    %c0_4 = arith.constant 0 : index
    %3 = vector.load %arg3[%c0_3, %c0_4] : memref<1x512xf32, #tpu.memory_space<vmem>>, vector<1x512xf32>
    %4 = vector.broadcast %3 : vector<1x512xf32> to vector<8x512xf32>
    %5 = arith.addf %2, %4 : vector<8x512xf32>
    %c0_5 = arith.constant 0 : index
    %c0_6 = arith.constant 0 : index
    %6 = vector.load %arg4[%c0_5, %c0_6] : memref<8x512xf32, #tpu.memory_space<vmem>>, vector<8x512xf32>
    tpu.vector_store %arg4[%c0_5, %c0_6], %5 {strides = array<i32>} : memref<8x512xf32, #tpu.memory_space<vmem>>, vector<8x512xf32>,
    return
  }
  func.func @transform_0(%arg0: i32) -> (i32, i32) {
    %c0_i32 = arith.constant 0 : i32
    %c0_i32_0 = arith.constant 0 : i32
    return %arg0, %c0_i32 : i32, i32
  }
  func.func @transform_1(%arg0: i32) -> (i32, i32) {
    %c0_i32 = arith.constant 0 : i32
    %c0_i32_0 = arith.constant 0 : i32
    %c0_i32_1 = arith.constant 0 : i32
    return %c0_i32, %c0_i32_0 : i32, i32
  }
  func.func @transform_2(%arg0: i32) -> (i32, i32) {
    %c0_i32 = arith.constant 0 : i32
    %c0_i32_0 = arith.constant 0 : i32
    %c0_i32_1 = arith.constant 0 : i32
    return %c0_i32, %c0_i32_0 : i32, i32
  }
  func.func @transform_3(%arg0: i32) -> (i32, i32) {
    %c0_i32 = arith.constant 0 : i32
    %c0_i32_0 = arith.constant 0 : i32
    return %arg0, %c0_i32 : i32, i32
  }
}

</mosaic_0001>

<bundles_post_ra>
// kernel: tile.8
= control target key start
LH: loop header
LB: loop body
LE: loop exit
PB: predicated region body
PF: predicated region fallthrough
CT: control target
= control target key end

     0   :  { %2 = vsyncpa [#allocation1], 0  ;;  %s63_s6 = smov [#allocation0]   ;;  %s101_s0 = inlined_call_operand.hbm [shape: f32[8], index: 0, kind: input, shape index: {}]   ;;  %s102_s1 = inlined_call_operand.vmem [shape: f32[64,8], index: 1, kind: output, shape index: {}]  }
   0x1   :  { %s9_s7 = sshll.u32 %s63_s6, 4  ;;  %s10_s7 = int_to_ptr.vmem [resolvable:$true] %s9_s7 }
   0x2   :  { %s49_s8 = scalar_lea.vmem %s10_s7, 16  ;;  %s53_s9 = scalar_lea.vmem %s10_s7, 32 }
   0x3   :  { %p50_p0 = scmp.ne.s32.totalorder %s10_s7, %s49_s8  ;;  %p54_p1 = scmp.lt.s32.totalorder %s10_s7, %s10_s7 }
   0x4   :  { %p55_p2 = scmp.lt.s32.totalorder %s53_s9, %s49_s8 }
   0x6   :  { %p56_p3 = por %p55_p2, %p54_p1 }
   0x8   :  { %p57_p4 = pnand %p56_p3, %p50_p0 }
   0xa   :  { %60 = shalt.err (!%p57_p4)
}
   0xb   :  { %12 = dma.hbm_to_vmem [thread:$0]  %s101_s0, 16, %s10_s7, [#allocation1]  }
   0xc   :  { %61 = dma.done.wait [#allocation1], 16  }
   0xd   :  { %62 = vsyncadd [#allocation1], 4294967280  ;;  %v16_v0 = vld [vmem:[#allocation0] ss:$0 sm:$0xff] }
   0xe   :  { %17 = vst [vmem:[%s102_s1] sm:$0xff] %v16_v0  ;;  %33 = vst [vmem:[%s102_s1 + $0x8] sm:$0xff] %v16_v0 }
   0xf   :  { %34 = vst [vmem:[%s102_s1 + $0x10] sm:$0xff] %v16_v0  ;;  %35 = vst [vmem:[%s102_s1 + $0x18] sm:$0xff] %v16_v0 }
  0x10   :  { %36 = vst [vmem:[%s102_s1 + $0x20] sm:$0xff] %v16_v0  ;;  %37 = vst [vmem:[%s102_s1 + $0x28] sm:$0xff] %v16_v0 }
  0x11   :  { %38 = vst [vmem:[%s102_s1 + $0x30] sm:$0xff] %v16_v0  ;;  %39 = vst [vmem:[%s102_s1 + $0x38] sm:$0xff] %v16_v0 }
  0x12   :  { %32 = vsyncpa [#allocation1], 1 }

// kernel: tile.9
= control target key start
LH: loop header
LB: loop body
LE: loop exit
PB: predicated region body
PF: predicated region fallthrough
CT: control target
= control target key end

     0   :  { %vm6_vm0 = vcmask 1043458   ;;  %s11_s6 = smov 3  ;;  %s14_s7 = smov 12  ;;  %vm8_vm1 = vcmask 64512   ;;  %vm20_vm2 = vcmask 1048512   ;;  %vm32_vm3 = vcmask 982912   ;;  %s417_s0 = inlined_call_operand.vmem [shape: f32[64,8], index: 0, kind: input, shape index: {}]   ;;  %s418_s1 = inlined_call_operand.vmem [shape: f32[1,512], index: 1, kind: output, shape index: {}]  }
   0x1   :  { %v220_v0 = vld [vmem:[%s417_s0 + $0xf] ss:$16 sm:%s11_s6]   ;;  %s35_s12 = smov 3  ;;  %s38_s15 = smov 12  ;;  %vm44_vm4 = vcmask 917312   ;;  %vm56_vm5 = vcmask 851712  }
   0x2   :  { %v221_v1 = vld [vmem:[%s417_s0 + $0xf] ss:$16 sm:%s14_s7]   ;;  %v224_v3 = vld [vmem:[%s417_s0 + $0xd] ss:$16 sm:%s35_s12]   ;;  %s268_s16 = smov 120   ;;  %s23_s19 = smov 3 }
   0x3   :  { %v17_v2 = vsel %vm6_vm0, %v221_v1, %v220_v0  ;;  %v225_v4 = vld [vmem:[%s417_s0 + $0xd] ss:$16 sm:%s38_s15]   ;;  %s26_s20 = smov 12  ;;  %v222_v6 = vld [vmem:[%s417_s0 + $0xe] ss:$16 sm:%s23_s19]   ;;  %s47_s25 = smov 3 }
   0x4   :  { %18 = vrot.lane.b32.xlu0 %v17_v2, %s268_s16  ;;  %v41_v5 = vsel %vm6_vm0, %v225_v4, %v224_v3  ;;  %v223_v7 = vld [vmem:[%s417_s0 + $0xe] ss:$16 sm:%s26_s20]   ;;  %s269_s26 = smov 104   ;;  %s50_s29 = smov 12  ;;  %vm68_vm6 = vcmask 786112   ;;  %vm80_vm7 = vcmask 720512  }
   0x5   :  { %42 = vrot.lane.b32.xlu1 %v41_v5, %s269_s26  ;;  %v29_v8 = vsel %vm6_vm0, %v223_v7, %v222_v6  ;;  %v226_v9 = vld [vmem:[%s417_s0 + $0xc] ss:$16 sm:%s47_s25]   ;;  %s59_s3 = smov 3  ;;  %s62_s4 = smov 12  ;;  %vm92_vm8 = vcmask 654912   ;;  %vm104_vm9 = vcmask 589312  }
   0x6   :  { %v227_v10 = vld [vmem:[%s417_s0 + $0xc] ss:$16 sm:%s50_s29]   ;;  %s270_s5 = smov 112   ;;  %v228_v12 = vld [vmem:[%s417_s0 + $0xb] ss:$16 sm:%s59_s3]   ;;  %s71_s8 = smov 3 }
   0x7   :  { %v53_v11 = vsel %vm6_vm0, %v227_v10, %v226_v9  ;;  %v229_v13 = vld [vmem:[%s417_s0 + $0xb] ss:$16 sm:%s62_s4]   ;;  %v230_v14 = vld [vmem:[%s417_s0 + $0xa] ss:$16 sm:%s71_s8]   ;;  %s74_s13 = smov 12  ;;  %s271_s14 = smov 96  }
   0x8   :  { %30 = vrot.lane.b32.xlu0 %v29_v8, %s270_s5  ;;  %v65_v15 = vsel %vm6_vm0, %v229_v13, %v228_v12  ;;  %v231_v16 = vld [vmem:[%s417_s0 + $0xa] ss:$16 sm:%s74_s13]   ;;  %s83_s17 = smov 3  ;;  %s86_s18 = smov 12  ;;  %vm116_vm10 = vcmask 523712   ;;  %vm128_vm11 = vcmask 458112  }
   0x9   :  { %54 = vrot.lane.b32.xlu1 %v53_v11, %s271_s14  ;;  %v77_v17 = vsel %vm6_vm0, %v231_v16, %v230_v14  ;;  %v232_v18 = vld [vmem:[%s417_s0 + $0x9] ss:$16 sm:%s83_s17]   ;;  %s95_s23 = smov 3  ;;  %s272_s24 = smov 88   ;;  %vm140_vm12 = vcmask 392512   ;;  %vm152_vm13 = vcmask 326912  }
   0xa   :  { %v233_v19 = vld [vmem:[%s417_s0 + $0x9] ss:$16 sm:%s86_s18]   ;;  %v234_v20 = vld [vmem:[%s417_s0 + $0x8] ss:$16 sm:%s95_s23]   ;;  %s98_s27 = smov 12  ;;  %s107_s30 = smov 3 }
   0xb   :  { %v89_v21 = vsel %vm6_vm0, %v233_v19, %v232_v18  ;;  %v235_v22 = vld [vmem:[%s417_s0 + $0x8] ss:$16 sm:%s98_s27]   ;;  %s110_s2 = smov 12  ;;  %s273_s3 = smov 80   ;;  %v236_v23 = vld [vmem:[%s417_s0 + $0x7] ss:$16 sm:%s107_s30]  }
   0xc   :  { %66 = vrot.lane.b32.xlu0 %v65_v15, %s272_s24  ;;  %s119_s6 = smov 3  ;;  %v101_v24 = vsel %vm6_vm0, %v235_v22, %v234_v20  ;;  %v237_v25 = vld [vmem:[%s417_s0 + $0x7] ss:$16 sm:%s110_s2]   ;;  %s122_s11 = smov 12  ;;  %vm164_vm14 = vcmask 261312   ;;  %vm176_vm15 = vcmask 195712  }
   0xd   :  { %78 = vrot.lane.b32.xlu1 %v77_v17, %s273_s3  ;;  %v238_v26 = vld [vmem:[%s417_s0 + $0x6] ss:$16 sm:%s119_s6]   ;;  %s274_s12 = smov 72   ;;  %s131_s15 = smov 3  ;;  %v113_v28 = vsel %vm6_vm0, %v237_v25, %v236_v23 }
   0xe   :  { %v239_v27 = vld [vmem:[%s417_s0 + $0x6] ss:$16 sm:%s122_s11]   ;;  %s134_s16 = smov 12  ;;  %v240_v29 = vld [vmem:[%s417_s0 + $0x5] ss:$16 sm:%s131_s15]   ;;  %s143_s19 = smov 3 }
   0xf   :  { %s275_s20 = smov 64   ;;  %v241_v30 = vld [vmem:[%s417_s0 + $0x5] ss:$16 sm:%s134_s16]   ;;  %s146_s23 = smov 12  ;;  %v125_v31 = vsel %vm6_vm0, %v239_v27, %v238_v26  ;;  %v242_v32 = vld [vmem:[%s417_s0 + $0x4] ss:$16 sm:%s143_s19]  }
  0x10   :  { %90 = vrot.lane.b32.xlu0 %v89_v21, %s274_s12  ;;  %s155_s26 = smov 3  ;;  %s158_s27 = smov 12  ;;  %v243_v33 = vld [vmem:[%s417_s0 + $0x4] ss:$16 sm:%s146_s23]   ;;  %v137_v34 = vsel %vm6_vm0, %v241_v30, %v240_v29 }
  0x11   :  { %102 = vrot.lane.b32.xlu1 %v101_v24, %s275_s20  ;;  %s276_s28 = smov 56   ;;  %s167_s2 = smov 3  ;;  %v244_v35 = vld [vmem:[%s417_s0 + $0x3] ss:$16 sm:%s155_s26]   ;;  %v149_v37 = vsel %vm6_vm0, %v243_v33, %v242_v32 }
  0x12   :  { %s170_s5 = smov 12  ;;  %s277_s6 = smov 48   ;;  %v245_v36 = vld [vmem:[%s417_s0 + $0x3] ss:$16 sm:%s158_s27]   ;;  %v246_v38 = vld [vmem:[%s417_s0 + $0x2] ss:$16 sm:%s167_s2]  }
  0x13   :  { %s179_s9 = smov 3  ;;  %v247_v39 = vld [vmem:[%s417_s0 + $0x2] ss:$16 sm:%s170_s5]   ;;  %s182_s14 = smov 12  ;;  %v161_v41 = vsel %vm6_vm0, %v245_v36, %v244_v35 }
  0x14   :  { %114 = vrot.lane.b32.xlu0 %v113_v28, %s276_s28  ;;  %s2_s15 = smov 3  ;;  %s278_s16 = smov 40   ;;  %v248_v42 = vld [vmem:[%s417_s0 + $0x1] ss:$16 sm:%s179_s9]   ;;  %v173_v46 = vsel %vm6_vm0, %v247_v39, %v246_v38 }
  0x15   :  { %126 = vrot.lane.b32.xlu1 %v125_v31, %s277_s6  ;;  %v3_v40 = vld [vmem:[%s417_s0] ss:$16 sm:%s2_s15]   ;;  %s4_s19 = smov 12  ;;  %s279_s24 = smov 32  }
  0x16   :  { %v5_v43 = vld [vmem:[%s417_s0] ss:$16 sm:%s4_s19]   ;;  %v249_v44 = vld [vmem:[%s417_s0 + $0x1] ss:$16 sm:%s182_s14]   ;;  %s280_s0 = smov 24   ;;  %s281_s27 = smov 16  }
  0x17   :  { %v7_v45 = vsel %vm6_vm0, %v5_v43, %v3_v40  ;;  %v185_v47 = vsel %vm6_vm0, %v249_v44, %v248_v42  ;;  %s282_s28 = smov 8   ;;  %vm188_vm0 = vcmask 130112  }
  0x18   :  { %138 = vrot.lane.b32.xlu0 %v137_v34, %s278_s16  ;;  %9 = vst.msk [vmem:[#allocation0] ss:$8 sm:$0xf] %vm8_vm1, %v7_v45  }
  0x19   :  { %150 = vrot.lane.b32.xlu1 %v149_v37, %s279_s24 }
  0x1c   :  { %162 = vrot.lane.b32.xlu0 %v161_v41, %s280_s0 }
  0x1d   :  { %174 = vrot.lane.b32.xlu1 %v173_v46, %s281_s27 }
  0x20   :  { %186 = vrot.lane.b32.xlu0 %v185_v47, %s282_s28 }
  0x76   :  { %v19_v48 = vpop.permute.xlu0 %18  }
  0x77   :  { %21 = vst.msk [vmem:[#allocation0] ss:$8 sm:$0xf] %vm20_vm2, %v19_v48   ;;  %v43_v49 = vpop.permute.xlu1 %42  }
  0x7a   :  { %v31_v50 = vpop.permute.xlu0 %30  }
  0x7b   :  { %33 = vst.msk [vmem:[#allocation0] ss:$8 sm:$0xf] %vm32_vm3, %v31_v50   ;;  %v55_v51 = vpop.permute.xlu1 %54  }
  0x7c   :  { %45 = vst.msk [vmem:[#allocation0] ss:$8 sm:$0xf] %vm44_vm4, %v43_v49  }
  0x7d   :  { %57 = vst.msk [vmem:[#allocation0] ss:$8 sm:$0xf] %vm56_vm5, %v55_v51  }
  0x7e   :  { %v67_v52 = vpop.permute.xlu0 %66  }
  0x7f   :  { %69 = vst.msk [vmem:[#allocation0] ss:$8 sm:$0xf] %vm68_vm6, %v67_v52   ;;  %v79_v53 = vpop.permute.xlu1 %78  }
  0x80   :  { %81 = vst.msk [vmem:[#allocation0] ss:$8 sm:$0xf] %vm80_vm7, %v79_v53  }
  0x82   :  { %v91_v54 = vpop.permute.xlu0 %90  }
  0x83   :  { %93 = vst.msk [vmem:[#allocation0] ss:$8 sm:$0xf] %vm92_vm8, %v91_v54   ;;  %v103_v55 = vpop.permute.xlu1 %102  }
  0x84   :  { %105 = vst.msk [vmem:[#allocation0] ss:$8 sm:$0xf] %vm104_vm9, %v103_v55  }
  0x86   :  { %v115_v56 = vpop.permute.xlu0 %114  }
  0x87   :  { %117 = vst.msk [vmem:[#allocation0] ss:$8 sm:$0xf] %vm116_vm10, %v115_v56   ;;  %v127_v57 = vpop.permute.xlu1 %126  }
  0x88   :  { %129 = vst.msk [vmem:[#allocation0] ss:$8 sm:$0xf] %vm128_vm11, %v127_v57  }
  0x8a   :  { %v139_v58 = vpop.permute.xlu0 %138  }
  0x8b   :  { %141 = vst.msk [vmem:[#allocation0] ss:$8 sm:$0xf] %vm140_vm12, %v139_v58   ;;  %v151_v59 = vpop.permute.xlu1 %150  }
  0x8c   :  { %153 = vst.msk [vmem:[#allocation0] ss:$8 sm:$0xf] %vm152_vm13, %v151_v59  }
  0x8e   :  { %v163_v60 = vpop.permute.xlu0 %162  }
  0x8f   :  { %165 = vst.msk [vmem:[#allocation0] ss:$8 sm:$0xf] %vm164_vm14, %v163_v60   ;;  %v175_v61 = vpop.permute.xlu1 %174  }
  0x90   :  { %177 = vst.msk [vmem:[#allocation0] ss:$8 sm:$0xf] %vm176_vm15, %v175_v61  }
  0x92   :  { %v187_v62 = vpop.permute.xlu0 %186  }
  0x93   :  { %189 = vst.msk [vmem:[#allocation0] ss:$8 sm:$0xf] %vm188_vm0, %v187_v62  }
  0x9a   :  { %v194_v63 = vld [vmem:[#allocation0] sm:$0x1]  ;;  %v199_v0 = vld [vmem:[#allocation0 + $0x8] sm:$0x1]  ;;  %v205_v1 = vld [vmem:[#allocation0 + $0x10] sm:$0x1] }
  0x9b   :  { %197 = vst [vmem:[%s418_s1] sm:$0x1] %v194_v63  ;;  %250 = vst [vmem:[%s418_s1 + $0x1] sm:$0x1] %v199_v0  ;;  %v212_v2 = vld [vmem:[#allocation0 + $0x18] sm:$0x1] }
  0x9c   :  { %251 = vst [vmem:[%s418_s1 + $0x2] sm:$0x1] %v205_v1  ;;  %252 = vst [vmem:[%s418_s1 + $0x3] sm:$0x1] %v212_v2 }

// kernel: deconv_block.1
= control target key start
LH: loop header
LB: loop body
LE: loop exit
PB: predicated region body
PF: predicated region fallthrough
CT: control target
= control target key end

     0   :  { %s524_s12 = smov 0   ;;  %s596_s0 = inlined_call_operand.vmem [shape: bf16[32,64], index: 0, kind: input, shape index: {}]   ;;  %s597_s1 = inlined_call_operand.vmem [shape: bf16[64,512], index: 1, kind: input, shape index: {}]   ;;  %s598_s2 = inlined_call_operand.vmem [shape: f32[1,512], index: 2, kind: input, shape index: {}]   ;;  %s599_s3 = inlined_call_operand.vmem [shape: f32[32,512], index: 3, kind: output, shape index: {}]  }
   0x1 LB: > { %s433_s13 = sadd.s32 4294967295, %s501_s12   ;;  %p437_p0 = scmp.ge.s32.totalorder %s501_s12, 1  ;;  %s501_s12 = sphi %s524_s12, %s13_s12  }
   0x2   : > { %p136_p1 = scmp.lt.s32.totalorder %s501_s12, 5 }
   0x4   : > { %p137_p2 = pnand %p437_p0, %p136_p1 }
   0x5   : > { %p159_p3 = scmp.lt.s32.totalorder (!%p137_p2), %s433_s13, 3 }
   0x6   : > { %140 = sbr.rel (%p137_p2) target bundleno = 228 (0xe4), region = 32 }
   0xb   : > { %v471_v0 = vld [vmem:[%s597_s1 + $0x64] ss:$16 sps:$4 sm:$0xff]   ;;  %v473_v1 = vld [vmem:[%s597_s1 + $0x6c] ss:$16 sps:$4 sm:$0xff]   ;;  %v503_v2 = vmov 0   ;;  %s601_s13 = smov (!%p159_p3, %s433_s13), 3  ;;  %v188_v18 = vlaneseq }
   0xc   : > { %324 = vmatprep.mubr.bf16.mxu0 %v503_v2  ;;  %365 = vmatprep.mubr.bf16.mxu1 %v503_v2  ;;  %v475_v3 = vld [vmem:[%s597_s1 + $0x60] ss:$16 sps:$4 sm:$0xff]   ;;  %v476_v4 = vld [vmem:[%s597_s1 + $0x68] ss:$16 sps:$4 sm:$0xff]   ;;  %v477_v5 = vld [vmem:[%s597_s1 + $0x44] ss:$16 sps:$4 sm:$0xff]  }
   0xd   : > { %300 = vmatprep.subr.bf16.mxu0 %v471_v0  ;;  %341 = vmatprep.subr.bf16.mxu1 %v473_v1  ;;  %v479_v6 = vld [vmem:[%s597_s1 + $0x4c] ss:$16 sps:$4 sm:$0xff]   ;;  %v481_v7 = vld [vmem:[%s597_s1 + $0x40] ss:$16 sps:$4 sm:$0xff]   ;;  %v482_v8 = vld [vmem:[%s597_s1 + $0x48] ss:$16 sps:$4 sm:$0xff]  }
   0xe   : > { %301 = vmatpush1.bf16.msra.mxu0 %v475_v3  ;;  %342 = vmatpush1.bf16.msra.mxu1 %v476_v4  ;;  %v483_v9 = vld [vmem:[%s597_s1 + $0x24] ss:$16 sps:$4 sm:$0xff]   ;;  %v485_v10 = vld [vmem:[%s597_s1 + $0x2c] ss:$16 sps:$4 sm:$0xff]   ;;  %v487_v11 = vld [vmem:[%s597_s1 + $0x20] ss:$16 sps:$4 sm:$0xff]  }
   0xf   : > { %302 = vmatprep.subr.bf16.mxu0 %v477_v5  ;;  %343 = vmatprep.subr.bf16.mxu1 %v479_v6  ;;  %v488_v12 = vld [vmem:[%s597_s1 + $0x28] ss:$16 sps:$4 sm:$0xff]   ;;  %v489_v13 = vld [vmem:[%s597_s1 + $0x4] ss:$16 sps:$4 sm:$0xff]   ;;  %v491_v14 = vld [vmem:[%s597_s1 + $0xc] ss:$16 sps:$4 sm:$0xff]  }
  0x10   : > { %s438_s17 = sshll.u32 %s601_s13, 2  ;;  %v493_v15 = vld [vmem:[%s597_s1] ss:$16 sps:$4 sm:$0xff]   ;;  %v494_v16 = vld [vmem:[%s597_s1 + $0x8] ss:$16 sps:$4 sm:$0xff]   ;;  %vm288_vm0 = vcmask 523264  }
  0x11   : > { %s162_s24 = scalar_lea.vmem %s596_s0, %s438_s17  ;;  %v189_v19 = vshrl.u32 %v188_v18, 7  ;;  %v186_v22 = vld [vmem:[%s598_s2] sm:$0xf]  ;;  %s461_s27 = sshll.u32 %s601_s13, 5 }
  0x12   : > { %303 = vmatpush1.bf16.msra.mxu0 %v481_v7  ;;  %344 = vmatpush1.bf16.msra.mxu1 %v482_v8  ;;  %v169_v17 = vld [vmem:[%s162_s24] sm:$0xf]  ;;  %s167_s30 = scalar_lea.vmem %s599_s3, %s461_s27 }
  0x13   : > { %304 = vmatprep.subr.bf16.mxu0 %v483_v9  ;;  %345 = vmatprep.subr.bf16.mxu1 %v485_v10  ;;  %v190_v20 = vsub.s32 0, %v189_v19  ;;  %v198_v21 = vsub.s32 2, %v189_v19  ;;  %v194_v23 = vsub.s32 1, %v189_v19  ;;  %v202_v24 = vsub.s32 3, %v189_v19 }
  0x15   : > { %v191_v25 = vrot.slane %v186_v22, %v190_v20  ;;  %v199_v26 = vrot.slane %v186_v22, %v198_v21  ;;  %v195_v27 = vrot.slane %v186_v22, %v194_v23  ;;  %v203_v28 = vrot.slane %v186_v22, %v202_v24 }
  0x16   : > { %305 = vmatpush1.bf16.msra.mxu0 %v487_v11  ;;  %346 = vmatpush1.bf16.msra.mxu1 %v488_v12 }
  0x17   : > { %306 = vmatprep.subr.bf16.mxu0 %v489_v13  ;;  %347 = vmatprep.subr.bf16.mxu1 %v491_v14 }
  0x1a   : > { %307 = vmatpush1.bf16.msra.mxu0 %v493_v15  ;;  %348 = vmatpush1.bf16.msra.mxu1 %v494_v16 }
  0x1d   : > { %457 = vmatmul.mubr.msk.bf16.vlgmr.msra.gmra.mxu0 %vm288_vm0, %v169_v17  ;;  %458 = vmatmul.mubr.msk.bf16.vlgmr.msra.gmra.mxu1 %vm288_vm0, %v169_v17 }
  0xdd   : > { %v326_v29 = vpop.f32.mrf.mxu0  ;;  %v367_v30 = vpop.f32.mrf.mxu1 }
  0xde   : > { %v327_v31 = vadd.f32 %v326_v29, %v191_v25  ;;  %v368_v32 = vadd.f32 %v367_v30, %v199_v26 }
  0xdf   : > { %v328_v33 = vpop.f32.mrf.mxu0  ;;  %v369_v34 = vpop.f32.mrf.mxu1 }
  0xe0   : > { %374 = vst [vmem:[%s167_s30] sm:$0xff] %v327_v31  ;;  %376 = vst [vmem:[%s167_s30 + $0x10] sm:$0xff] %v368_v32  ;;  %v329_v35 = vadd.f32 %v328_v33, %v195_v27  ;;  %v370_v36 = vadd.f32 %v369_v34, %v203_v28 }
  0xe1   : > { %v330_v37 = vpop.f32.mrf.mxu0  ;;  %v371_v38 = vpop.f32.mrf.mxu1 }
  0xe2   : > { %375 = vst [vmem:[%s167_s30 + $0x8] sm:$0xff] %v329_v35  ;;  %377 = vst [vmem:[%s167_s30 + $0x18] sm:$0xff] %v370_v36 }
  0xe3   : > { %v331_v39 = vpop.f32.mrf.mxu0  ;;  %v372_v40 = vpop.f32.mrf.mxu1 }
  0xe4 PF: > { %s13_s12 = sadd.s32 1, %s501_s12  }
  0xe5   : > { %p10_p4 = scmp.ge.s32.totalorder %s13_s12, 6  }
  0xe7   :  { %12 = sbr.rel (!%p10_p4) target bundleno = 1 (0x1), region = 62 }

</bundles_post_ra>
